<compile_context>
chip_gen: v5e
topology: v5e:2x2
jax: 0.10.0
libtpu: 0.0.40
codegen_flags: <defaults>
</compile_context>

<pallas_src>
import functools
import math

import jax
import jax.numpy as jnp
import numpy as np
from jax import lax
from jax.experimental import pallas as pl
from jax.experimental.pallas import tpu as pltpu

_VMEM_LIMIT = 32 * 1024 * 1024  # safe on v5e/v6e/v7x (v7x scoped default)


def _pick_tile(dim, pref, align):
    """Largest tile <= pref that divides dim and is a multiple of align (or dim)."""
    if dim <= pref:
        return dim
    t = (pref // align) * align
    while t >= align:
        if dim % t == 0:
            return t
        t -= align
    return dim


# ----------------------------------------------------------------------------
# Tiled matmul kernel (used for the fused QKV projection and the o-projection)
# ----------------------------------------------------------------------------
def _matmul_kernel(x_ref, w_ref, o_ref, acc_ref):
    @pl.when(pl.program_id(2) == 0)
    def _():
        acc_ref[...] = jnp.zeros_like(acc_ref)

    acc_ref[...] += jnp.dot(
        x_ref[...], w_ref[...], preferred_element_type=jnp.float32
    )

    @pl.when(pl.program_id(2) == pl.num_programs(2) - 1)
    def _():
        o_ref[...] = acc_ref[...].astype(o_ref.dtype)


def tiled_matmul(x, w, out_dtype, tm=256, tk=512, tn=512):
    """x: (M, K), w: (K, N) -> (M, N). bf16-in / f32-accumulate, tiled + pipelined."""
    M, K = x.shape
    K2, N = w.shape
    assert K == K2
    tm = _pick_tile(M, tm, 8)
    tk = _pick_tile(K, tk, 128)
    tn = _pick_tile(N, tn, 128)
    grid = (M // tm, N // tn, K // tk)
    return pl.pallas_call(
        _matmul_kernel,
        out_shape=jax.ShapeDtypeStruct((M, N), out_dtype),
        grid_spec=pltpu.PrefetchScalarGridSpec(
            num_scalar_prefetch=0,
            grid=grid,
            in_specs=[
                pl.BlockSpec((tm, tk), lambda i, j, k: (i, k)),
                pl.BlockSpec((tk, tn), lambda i, j, k: (k, j)),
            ],
            out_specs=pl.BlockSpec((tm, tn), lambda i, j, k: (i, j)),
            scratch_shapes=[pltpu.VMEM((tm, tn), jnp.float32)],
        ),
        compiler_params=pltpu.CompilerParams(
            dimension_semantics=("parallel", "parallel", "arbitrary"),
            vmem_limit_bytes=_VMEM_LIMIT,
        ),
    )(x, w)


# ----------------------------------------------------------------------------
# Flash-style attention kernel with fused RoPE
# ----------------------------------------------------------------------------
def _flash_attn_kernel(causal, *refs):
    if causal:
        (q_ref, k_ref, v_ref, cq_ref, sq_ref, ck_ref, sk_ref,
         o_ref, m_sc, l_sc, acc_sc) = refs
        mask_ref = None
    else:
        (q_ref, k_ref, v_ref, cq_ref, sq_ref, ck_ref, sk_ref, mask_ref,
         o_ref, m_sc, l_sc, acc_sc) = refs

    qi = pl.program_id(2)
    ki = pl.program_id(3)
    tq, D = q_ref.shape[1], q_ref.shape[2]
    tk = k_ref.shape[1]
    half = D // 2
    scale = 1.0 / math.sqrt(D)
    neg_min = float(jnp.finfo(jnp.float32).min)

    @pl.when(ki == 0)
    def _init():
        m_sc[...] = jnp.full_like(m_sc, -jnp.inf)
        l_sc[...] = jnp.zeros_like(l_sc)
        acc_sc[...] = jnp.zeros_like(acc_sc)

    def _rope(x, cos, sin):
        # rotate_half(x) == roll(x, D/2) * [-1]*(D/2)+[+1]*(D/2)
        lane = lax.broadcasted_iota(jnp.int32, x.shape, 1)
        sign = jnp.where(lane < half, -1.0, 1.0).astype(jnp.float32)
        return x * cos + pltpu.roll(x, shift=half, axis=1) * sign * sin

    def _update():
        # RoPE in f32, matmuls in bf16 with f32 accumulation.
        q = _rope(q_ref[0].astype(jnp.float32), cq_ref[0], sq_ref[0])
        k = _rope(k_ref[0].astype(jnp.float32), ck_ref[0], sk_ref[0])
        qb = q.astype(jnp.bfloat16)
        kb = k.astype(jnp.bfloat16)
        s = lax.dot_general(
            qb, kb, (((1,), (1,)), ((), ())),
            preferred_element_type=jnp.float32) * scale

        if causal:
            row = qi * tq + lax.broadcasted_iota(jnp.int32, (tq, tk), 0)
            col = ki * tk + lax.broadcasted_iota(jnp.int32, (tq, tk), 1)
            s = jnp.where(col <= row, s, neg_min)
        else:
            s = jnp.maximum(s + mask_ref[0].astype(jnp.float32), neg_min)

        m_prev = m_sc[...]
        m_new = jnp.maximum(m_prev, jnp.max(s, axis=-1, keepdims=True))
        alpha = jnp.exp(m_prev - m_new)
        p = jnp.exp(s - m_new)
        l_sc[...] = alpha * l_sc[...] + jnp.sum(p, axis=-1, keepdims=True)
        pv = lax.dot_general(
            p.astype(jnp.bfloat16), v_ref[0], (((1,), (0,)), ((), ())),
            preferred_element_type=jnp.float32)
        acc_sc[...] = alpha * acc_sc[...] + pv
        m_sc[...] = m_new

    if causal:
        # Skip KV tiles that are entirely in this q-tile's masked future.
        pl.when(ki * tk <= qi * tq + (tq - 1))(_update)
    else:
        _update()

    @pl.when(ki == pl.num_programs(3) - 1)
    def _finalize():
        inv_l = pl.reciprocal(l_sc[...], approx=True)
        o_ref[0] = (acc_sc[...] * inv_l).astype(o_ref.dtype)


def flash_attention(qkv, cos, sin, num_heads, head_dim, attn_mask=None):
    """qkv: (B, S, 3*H) fused projection output (columns [q | k | v], head-major).
    cos/sin: (B, S, D) f32.  attn_mask: None (causal fast path) or (B, S, S) f32
    additive mask.  Returns (B, S, H) in qkv.dtype."""
    B, S, _ = qkv.shape
    nH, D = num_heads, head_dim
    # TODO(synk): head_dim < 128 needs a fallback layout (XLA transpose to (B,H,S,D)).
    assert D % 128 == 0, "fused head-indexed layout requires head_dim % 128 == 0"

    tq = _pick_tile(S, 128, 8)
    tk = _pick_tile(S, 128, 8)
    grid = (B, nH, S // tq, S // tk)
    causal = attn_mask is None

    in_specs = [
        # q / k / v head blocks read straight out of the fused (B, S, 3*H) buffer
        pl.BlockSpec((1, tq, D), lambda b, h, qi, ki: (b, qi, h)),
        pl.BlockSpec((1, tk, D), lambda b, h, qi, ki: (b, ki, nH + h)),
        pl.BlockSpec((1, tk, D), lambda b, h, qi, ki: (b, ki, 2 * nH + h)),
        # cos/sin for the q rows and the k rows
        pl.BlockSpec((1, tq, D), lambda b, h, qi, ki: (b, qi, 0)),
        pl.BlockSpec((1, tq, D), lambda b, h, qi, ki: (b, qi, 0)),
        pl.BlockSpec((1, tk, D), lambda b, h, qi, ki: (b, ki, 0)),
        pl.BlockSpec((1, tk, D), lambda b, h, qi, ki: (b, ki, 0)),
    ]
    inputs = [qkv, qkv, qkv, cos, sin, cos, sin]
    if not causal:
        in_specs.append(pl.BlockSpec((1, tq, tk), lambda b, h, qi, ki: (b, qi, ki)))
        inputs.append(attn_mask)

    out_spec = pl.BlockSpec((1, tq, D), lambda b, h, qi, ki: (b, qi, h))

    return pl.pallas_call(
        functools.partial(_flash_attn_kernel, causal),
        out_shape=jax.ShapeDtypeStruct((B, S, nH * D), qkv.dtype),
        grid_spec=pltpu.PrefetchScalarGridSpec(
            num_scalar_prefetch=0,
            grid=grid,
            in_specs=in_specs,
            out_specs=out_spec,
            scratch_shapes=[
                pltpu.VMEM((tq, 1), jnp.float32),   # running max m
                pltpu.VMEM((tq, 1), jnp.float32),   # running denom l
                pltpu.VMEM((tq, D), jnp.float32),   # running numerator acc
            ],
        ),
        compiler_params=pltpu.CompilerParams(
            dimension_semantics=("parallel", "parallel", "parallel", "arbitrary"),
            vmem_limit_bytes=_VMEM_LIMIT,
        ),
    )(*inputs)


# ----------------------------------------------------------------------------
# Module wrapper
# ----------------------------------------------------------------------------
class AquilaAttentionPallas:
    def __init__(self, hidden_size, num_heads, max_position_embeddings=2048,
                 base=10000.0, compute_dtype=jnp.bfloat16, key=jax.random.PRNGKey(42)):
        assert hidden_size % num_heads == 0
        self.hidden_size = hidden_size
        self.num_heads = num_heads
        self.head_dim = hidden_size // num_heads
        self.compute_dtype = compute_dtype

        kq, kk, kv, ko = jax.random.split(key, 4)
        scale = 0.02
        # torch-style weights: (out_features, in_features), no bias (kept f32 for ref)
        self.q_w = scale * jax.random.normal(kq, (hidden_size, hidden_size), jnp.float32)
        self.k_w = scale * jax.random.normal(kk, (hidden_size, hidden_size), jnp.float32)
        self.v_w = scale * jax.random.normal(kv, (hidden_size, hidden_size), jnp.float32)
        self.o_w = scale * jax.random.normal(ko, (hidden_size, hidden_size), jnp.float32)

        # Fused QKV weight: (K, 3*hidden) bf16, columns = [q | k | v], head-major.
        self.w_qkv = jnp.concatenate(
            [self.q_w, self.k_w, self.v_w], axis=0).T.astype(compute_dtype)
        self.w_o = self.o_w.T.astype(compute_dtype)  # (hidden, hidden)

        # AquilaRotaryEmbedding caches
        inv_freq = 1.0 / base ** (jnp.arange(0, self.head_dim, 2, dtype=jnp.float32)
                                  / self.head_dim)
        t = jnp.arange(max_position_embeddings, dtype=jnp.float32)
        freqs = jnp.einsum("i,j->ij", t, inv_freq)
        emb = jnp.concatenate([freqs, freqs], axis=-1)       # (max_pos, head_dim)
        self.cos_cached = jnp.cos(emb).astype(jnp.float32)
        self.sin_cached = jnp.sin(emb).astype(jnp.float32)

    def __call__(self, hidden_states, attention_mask=None, position_ids=None):
        B, S, H = hidden_states.shape
        nH, D = self.num_heads, self.head_dim

        if position_ids is None:
            position_ids = jnp.arange(S, dtype=jnp.int32)
        pos = jnp.broadcast_to(position_ids, (B, S))          # per-batch positions OK
        cos = self.cos_cached[pos]                            # (B, S, D) f32
        sin = self.sin_cached[pos]

        # Fused QKV projection (bf16 in / f32 acc), output stays in (B, S, 3*H).
        x = hidden_states.astype(self.compute_dtype).reshape(B * S, H)
        qkv = tiled_matmul(x, self.w_qkv, out_dtype=self.compute_dtype)
        qkv = qkv.reshape(B, S, 3 * H)

        mask = None
        if attention_mask is not None:
            mask = attention_mask.reshape(B, S, S).astype(jnp.float32)

        # Flash attention with fused RoPE; output already in (B, S, H) layout.
        attn = flash_attention(qkv, cos, sin, nH, D, attn_mask=mask)

        out = tiled_matmul(attn.reshape(B * S, H), self.w_o,
                           out_dtype=hidden_states.dtype)
        return out.reshape(B, S, H)


# ----------------------------------------------------------------------------
# Pure-JAX f32 reference (mirrors the PyTorch forward) for validation
# ----------------------------------------------------------------------------
def reference_forward(mod, hidden_states, attention_mask, position_ids):
    B, S, H = hidden_states.shape
    nH, D = mod.num_heads, mod.head_dim
    q = (hidden_states @ mod.q_w.T).reshape(B, S, nH, D).transpose(0, 2, 1, 3)
    k = (hidden_states @ mod.k_w.T).reshape(B, S, nH, D).transpose(0, 2, 1, 3)
    v = (hidden_states @ mod.v_w.T).reshape(B, S, nH, D).transpose(0, 2, 1, 3)

    cos = mod.cos_cached[position_ids][None, None]  # (1,1,S,D)
    sin = mod.sin_cached[position_ids][None, None]

    def rotate_half(x):
        x1, x2 = jnp.split(x, 2, axis=-1)
        return jnp.concatenate([-x2, x1], axis=-1)

    q = q * cos + rotate_half(q) * sin
    k = k * cos + rotate_half(k) * sin

    s = jnp.einsum("bhqd,bhkd->bhqk", q, k) / math.sqrt(D)
    s = s + attention_mask
    s = jnp.maximum(s, jnp.finfo(jnp.float32).min)
    p = jax.nn.softmax(s.astype(jnp.float32), axis=-1)
    o = jnp.einsum("bhqk,bhkd->bhqd", p, v)
    o = o.transpose(0, 2, 1, 3).reshape(B, S, H)
    return o @ mod.o_w.T


# ----------------------------------------------------------------------------
if __name__ == "__main__":
    B, S = 2, 8
    hidden_size, num_heads = 256, 2   # head_dim = 128 (lane-aligned)

    key = jax.random.PRNGKey(0)
    k_x, k_w = jax.random.split(key)
    hidden_states = jax.random.normal(k_x, (B, S, hidden_size), jnp.float32)
    position_ids = jnp.arange(S, dtype=jnp.int32)

    # causal attention mask (B, 1, S, S): 0 where allowed, finfo.min where masked
    neg_inf = jnp.finfo(jnp.float32).min
    causal = jnp.tril(jnp.ones((S, S), jnp.bool_))
    attention_mask = jnp.where(causal, 0.0, neg_inf)[None, None]
    attention_mask = jnp.broadcast_to(attention_mask, (B, 1, S, S)).astype(jnp.float32)

    mod = AquilaAttentionPallas(hidden_size, num_heads, key=k_w)

    # Path 1: explicit additive attention mask (matches the torch call signature).
    out_masked = jax.block_until_ready(mod(hidden_states, attention_mask, position_ids))
    # Path 2: causal fast path (mask generated in-kernel, no S*S HBM traffic).
    out_causal = jax.block_until_ready(mod(hidden_states, None, position_ids))

    ref = reference_forward(mod, hidden_states, attention_mask, position_ids)
    # bf16-in / f32-accumulate kernels vs f32 reference -> bf16-level tolerance.
    np.testing.assert_allclose(np.asarray(out_masked), np.asarray(ref),
                               rtol=5e-2, atol=5e-3)
    np.testing.assert_allclose(np.asarray(out_causal), np.asarray(ref),
                               rtol=5e-2, atol=5e-3)

    print("KERNEL_OK")
</pallas_src>

<mosaic_0001>
module attributes {stable_mosaic.version = 11 : i64} {
  func.func @_matmul_kernel(%arg0: i32, %arg1: i32, %arg2: i32, %arg3: memref<16x256xbf16, #tpu.memory_space<vmem>>, %arg4: memref<256x384xbf16, #tpu.memory_space<vmem>>, %arg5: memref<16x384xbf16, #tpu.memory_space<vmem>>, %arg6: memref<16x384xf32, #tpu.memory_space<vmem>>) attributes {dimension_semantics = [#tpu.dimension_semantics<parallel>, #tpu.dimension_semantics<parallel>, #tpu.dimension_semantics<arbitrary>], iteration_bounds = array<i64: 1, 2, 1>, scalar_prefetch = 0 : i64, scratch_operands = 1 : i64, tpu.core_type = #tpu.core_type<tc>, window_params = [{transform_indices = @transform_0, window_bounds = array<i64: 16, 256>}, {transform_indices = @transform_1, window_bounds = array<i64: 256, 384>}, {transform_indices = @transform_2, window_bounds = array<i64: 16, 384>}]} {
    %c0_i32 = arith.constant 0 : i32
    %0 = arith.cmpi eq, %arg2, %c0_i32 : i32
    %1 = arith.extui %0 : i1 to i32
    %c0_i32_0 = arith.constant 0 : i32
    %2 = arith.cmpi ne, %1, %c0_i32_0 : i32
    scf.if %2 {
      %cst_10 = arith.constant 0.000000e+00 : f32
      %12 = vector.broadcast %cst_10 : f32 to vector<16x384xf32>
      %c0_11 = arith.constant 0 : index
      %c0_12 = arith.constant 0 : index
      %13 = vector.load %arg6[%c0_11, %c0_12] : memref<16x384xf32, #tpu.memory_space<vmem>>, vector<16x384xf32>
      tpu.vector_store %arg6[%c0_11, %c0_12], %12 {strides = array<i32>} : memref<16x384xf32, #tpu.memory_space<vmem>>, vector<16x384xf32>,
    } else {
    }
    %c0 = arith.constant 0 : index
    %c0_1 = arith.constant 0 : index
    %3 = vector.load %arg6[%c0, %c0_1] : memref<16x384xf32, #tpu.memory_space<vmem>>, vector<16x384xf32>
    %c0_2 = arith.constant 0 : index
    %c0_3 = arith.constant 0 : index
    %4 = vector.load %arg3[%c0_2, %c0_3] : memref<16x256xbf16, #tpu.memory_space<vmem>>, vector<16x256xbf16>
    %c0_4 = arith.constant 0 : index
    %c0_5 = arith.constant 0 : index
    %5 = vector.load %arg4[%c0_4, %c0_5] : memref<256x384xbf16, #tpu.memory_space<vmem>>, vector<256x384xbf16>
    %cst = arith.constant dense<0.000000e+00> : vector<16x384xf32>
    %6 = tpu.matmul %4, %5, %cst {dimension_numbers = #tpu.dot_dimension_numbers<[1], [0], [0], [1], [0, 0, 1, 1], [], []>} : vector<16x256xbf16>, vector<256x384xbf16>, vector<16x384xf32> -> vector<16x384xf32>
    %7 = arith.addf %3, %6 : vector<16x384xf32>
    %c0_6 = arith.constant 0 : index
    %c0_7 = arith.constant 0 : index
    %8 = vector.load %arg6[%c0_6, %c0_7] : memref<16x384xf32, #tpu.memory_space<vmem>>, vector<16x384xf32>
    tpu.vector_store %arg6[%c0_6, %c0_7], %7 {strides = array<i32>} : memref<16x384xf32, #tpu.memory_space<vmem>>, vector<16x384xf32>,
    %c0_i32_8 = arith.constant 0 : i32
    %9 = arith.cmpi eq, %arg2, %c0_i32_8 : i32
    %10 = arith.extui %9 : i1 to i32
    %c0_i32_9 = arith.constant 0 : i32
    %11 = arith.cmpi ne, %10, %c0_i32_9 : i32
    scf.if %11 {
      %c0_10 = arith.constant 0 : index
      %c0_11 = arith.constant 0 : index
      %12 = vector.load %arg6[%c0_10, %c0_11] : memref<16x384xf32, #tpu.memory_space<vmem>>, vector<16x384xf32>
      %13 = arith.truncf %12 : vector<16x384xf32> to vector<16x384xbf16>
      %c0_12 = arith.constant 0 : index
      %c0_13 = arith.constant 0 : index
      %14 = vector.load %arg5[%c0_12, %c0_13] : memref<16x384xbf16, #tpu.memory_space<vmem>>, vector<16x384xbf16>
      tpu.vector_store %arg5[%c0_12, %c0_13], %13 {strides = array<i32>} : memref<16x384xbf16, #tpu.memory_space<vmem>>, vector<16x384xbf16>,
    } else {
    }
    return
  }
  func.func @transform_0(%arg0: i32, %arg1: i32, %arg2: i32) -> (i32, i32) {
    %c0_i32 = arith.constant 0 : i32
    return %arg0, %arg2 : i32, i32
  }
  func.func @transform_1(%arg0: i32, %arg1: i32, %arg2: i32) -> (i32, i32) {
    %c0_i32 = arith.constant 0 : i32
    return %arg2, %arg1 : i32, i32
  }
  func.func @transform_2(%arg0: i32, %arg1: i32, %arg2: i32) -> (i32, i32) {
    %c0_i32 = arith.constant 0 : i32
    return %arg0, %arg1 : i32, i32
  }
}

</mosaic_0001>

<bundles_post_ra>
// kernel: tpu_custom_call.1
= control target key start
LH: loop header
LB: loop body
LE: loop exit
PB: predicated region body
PF: predicated region fallthrough
CT: control target
= control target key end

     0   :  { %7 = vsyncpa [#allocation4], 0  ;;  %s1579_s0 = inlined_call_operand.hbm [shape: bf16[16,256], index: 0, kind: input, shape index: {}]   ;;  %s1580_s1 = inlined_call_operand.hbm [shape: bf16[256,768], index: 1, kind: input, shape index: {}]   ;;  %s1581_s2 = inlined_call_operand.hbm [shape: bf16[16,768], index: 2, kind: output, shape index: {}]  }
   0x1   :  { %8 = vsyncpa [#allocation7], 0 }
   0x2   :  { %10 = vsyncpa [#allocation7 + $0x1], 0 }
   0x3   :  { %11 = vsyncpa [#allocation5], 0 }
   0x4   :  { %13 = vsyncpa [#allocation5 + $0x1], 0  ;;  %s1332_s9 = smov 0   ;;  %s1334_s10 = smov 0  }
   0x5   :  { %s1336_s11 = smov 0   ;;  %s1338_s12 = smov 0  }
   0x6   :  { %s1340_s13 = smov 0   ;;  %s1342_s14 = smov 0  }
   0x7 LB: > { %s813_s15 = sadd.s32 4294967295, %s1306_s14   ;;  %s814_s16 = sadd.s32 4294967294, %s1306_s14   ;;  %s1306_s14 = sphi %s1342_s14, %s19_s14   ;;  %s1302_s13 = sphi %s1340_s13, %s1592_s13   ;;  %s1298_s12 = sphi %s1338_s12, %s1591_s12   ;;  %s1294_s11 = sphi %s1336_s11, %s1590_s11   ;;  %s1290_s10 = sphi %s1334_s10, %s1589_s10   ;;  %s1286_s9 = sphi %s1332_s9, %s1588_s9  }
   0x8   : > { %p88_p0 = scmp.ne.s32.totalorder %s1290_s10, %s1286_s9  ;;  %p1366_p1 = scmp.eq.s32.totalorder %s813_s15, 0 }
   0x9   : > { %p1370_p2 = scmp.eq.s32.totalorder %s813_s15, 1  ;;  %p120_p3 = scmp.eq.s32.totalorder %s814_s16, 1 }
   0xa   : > { %p1376_p4 = por %p1366_p1, %p88_p0  ;;  %p815_p5 = scmp.ge.s32.totalorder %s1306_s14, 1 }
   0xb   : > { %p1381_p6 = por %p120_p3, %p88_p0  ;;  %p127_p7 = scmp.lt.s32.totalorder %s1306_s14, 3 }
   0xc   : > { %s144_s23 = sshll.u32 %s1579_s0, 4  ;;  %s1308_s25 = smov [#allocation3]   ;;  %s145_s23 = int_to_ptr.hbm [resolvable:$true] %s144_s23 }
   0xd   : > { %p1389_p8 = pnand %p815_p5, %p127_p7  ;;  %s146_s26 = sshll.u32 %s1308_s25, 4  ;;  %s147_s26 = int_to_ptr.vmem [resolvable:$true] %s146_s26 }
   0xe   : > { %p817_p11 = scmp.ge.s32.totalorder %s1306_s14, 2  ;;  %s1309_s27 = smov 128  }
   0xf   : > { %p1087_p9 = pneg %p1389_p8  ;;  %s1310_s28 = smov 8  }
  0x10   : > { %s34_s29 = sadd.s32 1, %s1302_s13  ;;  %s75_s30 = sadd.s32 1, %s1294_s11 }
  0x11   : > { %p1088_p10 = pnand %p1087_p9, %p1366_p1  ;;  %p36_p12 = scmp.ge.s32.totalorder %s34_s29, 2 }
  0x12   : > { %p82_p13 = scmp.ne.s32.totalorder %s1294_s11, %s1290_s10  ;;  %p83_p0 = scmp.eq.s32.totalorder %s1306_s14, 0 }
  0x13   : > { %1090 = dma.hbm_to_vmem [thread:$0]  (!%p1088_p10), %s145_s23, 256, %s147_s26, [#allocation4], %s1309_s27, %s1309_s27, %s1310_s28  }
  0x14   : > { %s1594_s29 = smov (%p36_p12, %s34_s29), 0  ;;  %p84_p3 = por %p83_p0, %p82_p13 }
  0x15   : > { %p1407_p5 = por %p1370_p2, %p82_p13  ;;  %s71_s4 = ssub.s32 %s1302_s13, %s1594_s29 }
  0x16   : > { %p1100_p7 = scmp.lt.s32.totalorder %s1306_s14, 2  ;;  %p73_p9 = scmp.eq.s32.totalorder %s71_s4, 0 }
  0x17   : > { %s160_s5 = sand.u32 1, %s1294_s11   ;;  %s1024_s8 = smul.u32 12, %s1302_s13 }
  0x18   : > { %s1076_s6 = smul.u32 384, %s160_s5  ;;  %p1092_p10 = pnand %p1100_p7, %p84_p3 }
  0x19   : > { %s1416_s7 = scalar_select %p73_p9, %s1294_s11, %s75_s30  }
  0x1a   : > { %s164_s15 = scalar_lea.vmem [#allocation6], %s1076_s6  ;;  %s172_s23 = scalar_lea.hbm %s1580_s1, %s1024_s8 }
  0x1b   : > { %s175_s16 = sshll.u32 %s164_s15, 4  ;;  %s173_s18 = sshll.u32 %s172_s23, 4  ;;  %s176_s16 = int_to_ptr.vmem [resolvable:$true] %s175_s16  ;;  %s174_s18 = int_to_ptr.hbm [resolvable:$true] %s173_s18 }
  0x1c   : > { %s161_s25 = scalar_lea.sflag [#allocation7], %s160_s5  ;;  %s1311_s26 = smov 384  }
  0x1d   : > { %s1312_s27 = smov 192   ;;  %s1313_s28 = smov 12  }
  0x1e   : > { %1094 = dma.hbm_to_vmem [thread:$0]  (!%p1092_p10), %s174_s18, 6144, %s176_s16, %s161_s25, %s1311_s26, %s1312_s27, %s1313_s28  }
  0x1f   : > { %187 = sbr.rel (%p1389_p8) target bundleno = 252 (0xfc), region = 28 }
  0x24   : > { %1273 = dma.done.wait (%p1366_p1), [#allocation4], 256  }
  0x25   : > { %1275 = vsyncadd (%p1366_p1), [#allocation4], 4294967040  ;;  %s1429_s30 = sand.u32 1, %s1290_s10  }
  0x26   : > { %s1077_s4 = smul.u32 384, %s1429_s30  ;;  %s195_s5 = scalar_lea.sflag [#allocation7], %s1429_s30 }
  0x28   : > { %s1433_s6 = scalar_lea.vmem [#allocation6], %s1077_s4 }
  0x29   : > { %1277 = dma.done.wait (%p1376_p4), %s195_s5, 6144  }
  0x2a   : > { %1279 = vsyncadd (%p1376_p4), %s195_s5, 4294961152  ;;  %v915_v0 = vld [vmem:[%s1433_s6 + $0xa8] sm:$0xf]  ;;  %v1049_v1 = vld [vmem:[%s1433_s6 + $0xb0] sm:$0xf0]  ;;  %s1078_s17 = smul.u32 24, %s1429_s30 }
  0x2b   : > { %v1011_v2 = vld [vmem:[%s1433_s6 + $0x168] sm:$0xf]  ;;  %v916_v3 = vor.u32 %v1049_v1, %v915_v0  ;;  %v1073_v4 = vld [vmem:[%s1433_s6 + $0x170] sm:$0xf0]  ;;  %v1048_v5 = vld [vmem:[%s1433_s6 + $0xac] sm:$0xf] }
  0x2c   : > { %v917_v6 = vld [vmem:[%s1433_s6 + $0xb4] sm:$0xf0]  ;;  %v1012_v7 = vor.u32 %v1073_v4, %v1011_v2  ;;  %v1072_v9 = vld [vmem:[%s1433_s6 + $0x16c] sm:$0xf]  ;;  %v903_v11 = vld [vmem:[%s1433_s6 + $0x90] sm:$0xf] }
  0x2d   : > { %v920_v8 = vor.u32 %v1048_v5, %v917_v6  ;;  %v1013_v10 = vld [vmem:[%s1433_s6 + $0x174] sm:$0xf0]  ;;  %574 = vmatpush.bf16.msra.mxu0 %v916_v3  ;;  %v1046_v13 = vld [vmem:[%s1433_s6 + $0x98] sm:$0xf0]  ;;  %v999_v14 = vld [vmem:[%s1433_s6 + $0x150] sm:$0xf] }
  0x2e   : > { %v1016_v12 = vor.u32 %v1072_v9, %v1013_v10  ;;  %v1070_v15 = vld [vmem:[%s1433_s6 + $0x158] sm:$0xf0]  ;;  %588 = vmatpush.bf16.msra.mxu1 %v1012_v7  ;;  %v904_v16 = vor.u32 %v1046_v13, %v903_v11  ;;  %v1045_v18 = vld [vmem:[%s1433_s6 + $0x94] sm:$0xf]  ;;  %v905_v19 = vld [vmem:[%s1433_s6 + $0x9c] sm:$0xf0] }
  0x2f   : > { %602 = vmatpush.bf16.msra.mxu2 %v920_v8  ;;  %v1000_v17 = vor.u32 %v1070_v15, %v999_v14  ;;  %v1069_v20 = vld [vmem:[%s1433_s6 + $0x154] sm:$0xf]  ;;  %v908_v21 = vor.u32 %v1045_v18, %v905_v19  ;;  %v1001_v22 = vld [vmem:[%s1433_s6 + $0x15c] sm:$0xf0]  ;;  %v891_v23 = vld [vmem:[%s1433_s6 + $0x78] sm:$0xf] }
  0x30   : > { %616 = vmatpush.bf16.msra.mxu3 %v1016_v12  ;;  %v1043_v24 = vld [vmem:[%s1433_s6 + $0x80] sm:$0xf0]  ;;  %v1004_v25 = vor.u32 %v1069_v20, %v1001_v22  ;;  %v987_v26 = vld [vmem:[%s1433_s6 + $0x138] sm:$0xf]  ;;  %v1042_v28 = vld [vmem:[%s1433_s6 + $0x7c] sm:$0xf] }
  0x31   : > { %v1067_v27 = vld [vmem:[%s1433_s6 + $0x140] sm:$0xf0]  ;;  %575 = vmatpush.bf16.msra.mxu0 %v904_v16  ;;  %v892_v29 = vor.u32 %v1043_v24, %v891_v23  ;;  %v893_v30 = vld [vmem:[%s1433_s6 + $0x84] sm:$0xf0]  ;;  %v1066_v31 = vld [vmem:[%s1433_s6 + $0x13c] sm:$0xf] }
  0x32   : > { %v989_v32 = vld [vmem:[%s1433_s6 + $0x144] sm:$0xf0]  ;;  %589 = vmatpush.bf16.msra.mxu1 %v1000_v17  ;;  %v988_v33 = vor.u32 %v1067_v27, %v987_v26  ;;  %v896_v34 = vor.u32 %v1042_v28, %v893_v30  ;;  %v879_v35 = vld [vmem:[%s1433_s6 + $0x60] sm:$0xf]  ;;  %v1040_v36 = vld [vmem:[%s1433_s6 + $0x68] sm:$0xf0] }
  0x33   : > { %603 = vmatpush.bf16.msra.mxu2 %v908_v21  ;;  %v975_v37 = vld [vmem:[%s1433_s6 + $0x120] sm:$0xf]  ;;  %v992_v38 = vor.u32 %v1066_v31, %v989_v32  ;;  %v1064_v39 = vld [vmem:[%s1433_s6 + $0x128] sm:$0xf0]  ;;  %v1039_v40 = vld [vmem:[%s1433_s6 + $0x64] sm:$0xf]  ;;  %v880_v44 = vor.u32 %v1040_v36, %v879_v35 }
  0x34   : > { %617 = vmatpush.bf16.msra.mxu3 %v1004_v25  ;;  %v881_v41 = vld [vmem:[%s1433_s6 + $0x6c] sm:$0xf0]  ;;  %v1063_v42 = vld [vmem:[%s1433_s6 + $0x124] sm:$0xf]  ;;  %v976_v45 = vor.u32 %v1064_v39, %v975_v37  ;;  %v867_v47 = vld [vmem:[%s1433_s6 + $0x48] sm:$0xf] }
  0x35   : > { %v977_v43 = vld [vmem:[%s1433_s6 + $0x12c] sm:$0xf0]  ;;  %576 = vmatpush.bf16.msra.mxu0 %v892_v29  ;;  %v884_v46 = vor.u32 %v1039_v40, %v881_v41  ;;  %v1037_v48 = vld [vmem:[%s1433_s6 + $0x50] sm:$0xf0]  ;;  %v963_v49 = vld [vmem:[%s1433_s6 + $0x108] sm:$0xf] }
  0x36   : > { %590 = vmatpush.bf16.msra.mxu1 %v988_v33  ;;  %v980_v50 = vor.u32 %v1063_v42, %v977_v43  ;;  %v1061_v51 = vld [vmem:[%s1433_s6 + $0x110] sm:$0xf0]  ;;  %v1036_v52 = vld [vmem:[%s1433_s6 + $0x4c] sm:$0xf]  ;;  %v869_v53 = vld [vmem:[%s1433_s6 + $0x54] sm:$0xf0]  ;;  %v868_v56 = vor.u32 %v1037_v48, %v867_v47 }
  0x37   : > { %604 = vmatpush.bf16.msra.mxu2 %v896_v34  ;;  %v1060_v54 = vld [vmem:[%s1433_s6 + $0x10c] sm:$0xf]  ;;  %v965_v55 = vld [vmem:[%s1433_s6 + $0x114] sm:$0xf0]  ;;  %v964_v57 = vor.u32 %v1061_v51, %v963_v49  ;;  %v872_v58 = vor.u32 %v1036_v52, %v869_v53  ;;  %v855_v59 = vld [vmem:[%s1433_s6 + $0x30] sm:$0xf] }
  0x38   : > { %618 = vmatpush.bf16.msra.mxu3 %v992_v38  ;;  %v1034_v60 = vld [vmem:[%s1433_s6 + $0x38] sm:$0xf0]  ;;  %v951_v61 = vld [vmem:[%s1433_s6 + $0xf0] sm:$0xf]  ;;  %v968_v62 = vor.u32 %v1060_v54, %v965_v55  ;;  %v1033_v0 = vld [vmem:[%s1433_s6 + $0x34] sm:$0xf] }
  0x39   : > { %577 = vmatpush.bf16.msra.mxu0 %v880_v44  ;;  %v1058_v63 = vld [vmem:[%s1433_s6 + $0xf8] sm:$0xf0]  ;;  %v857_v1 = vld [vmem:[%s1433_s6 + $0x3c] sm:$0xf0]  ;;  %v1057_v2 = vld [vmem:[%s1433_s6 + $0xf4] sm:$0xf]  ;;  %v856_v4 = vor.u32 %v1034_v60, %v855_v59 }
  0x3a   : > { %591 = vmatpush.bf16.msra.mxu1 %v976_v45  ;;  %v953_v3 = vld [vmem:[%s1433_s6 + $0xfc] sm:$0xf0]  ;;  %v952_v5 = vor.u32 %v1058_v63, %v951_v61  ;;  %v860_v6 = vor.u32 %v1033_v0, %v857_v1  ;;  %v843_v7 = vld [vmem:[%s1433_s6 + $0x18] sm:$0xf]  ;;  %v1031_v8 = vld [vmem:[%s1433_s6 + $0x20] sm:$0xf0] }
  0x3b   : > { %605 = vmatpush.bf16.msra.mxu2 %v884_v46  ;;  %v939_v9 = vld [vmem:[%s1433_s6 + $0xd8] sm:$0xf]  ;;  %v956_v10 = vor.u32 %v1057_v2, %v953_v3  ;;  %v1055_v11 = vld [vmem:[%s1433_s6 + $0xe0] sm:$0xf0]  ;;  %v1030_v12 = vld [vmem:[%s1433_s6 + $0x1c] sm:$0xf]  ;;  %v844_v16 = vor.u32 %v1031_v8, %v843_v7 }
  0x3c   : > { %619 = vmatpush.bf16.msra.mxu3 %v980_v50  ;;  %v845_v13 = vld [vmem:[%s1433_s6 + $0x24] sm:$0xf0]  ;;  %v1054_v14 = vld [vmem:[%s1433_s6 + $0xdc] sm:$0xf]  ;;  %v831_v17 = vld [vmem:[%s1433_s6] sm:$0xf]  ;;  %v940_v18 = vor.u32 %v1055_v11, %v939_v9 }
  0x3d   : > { %578 = vmatpush.bf16.msra.mxu0 %v868_v56  ;;  %v941_v15 = vld [vmem:[%s1433_s6 + $0xe4] sm:$0xf0]  ;;  %v848_v19 = vor.u32 %v1030_v12, %v845_v13  ;;  %v1028_v20 = vld [vmem:[%s1433_s6 + $0x8] sm:$0xf0]  ;;  %v927_v21 = vld [vmem:[%s1433_s6 + $0xc0] sm:$0xf] }
  0x3e   : > { %592 = vmatpush.bf16.msra.mxu1 %v964_v57  ;;  %v1052_v22 = vld [vmem:[%s1433_s6 + $0xc8] sm:$0xf0]  ;;  %v944_v23 = vor.u32 %v1054_v14, %v941_v15  ;;  %v1027_v24 = vld [vmem:[%s1433_s6 + $0x4] sm:$0xf]  ;;  %v833_v25 = vld [vmem:[%s1433_s6 + $0xc] sm:$0xf0]  ;;  %v832_v30 = vor.u32 %v1028_v20, %v831_v17 }
  0x3f   : > { %606 = vmatpush.bf16.msra.mxu2 %v872_v58  ;;  %v1051_v26 = vld [vmem:[%s1433_s6 + $0xc4] sm:$0xf]  ;;  %v929_v27 = vld [vmem:[%s1433_s6 + $0xcc] sm:$0xf0]  ;;  %v1050_v29 = vld [vmem:[%s1433_s6 + $0xb8] sm:$0xf0]  ;;  %v928_v33 = vor.u32 %v1052_v22, %v927_v21  ;;  %v836_v34 = vor.u32 %v1027_v24, %v833_v25 }
  0x40   : > { %620 = vmatpush.bf16.msra.mxu3 %v968_v62  ;;  %v923_v28 = vld [vmem:[%s1433_s6 + $0xb0] sm:$0xf]  ;;  %v1074_v32 = vld [vmem:[%s1433_s6 + $0x178] sm:$0xf0]  ;;  %v1026_v36 = vld [vmem:[#allocation3 + $0x4] sm:$0xf0]  ;;  %v932_v37 = vor.u32 %v1051_v26, %v929_v27 }
  0x41   : > { %579 = vmatpush.bf16.msra.mxu0 %v856_v4  ;;  %v1019_v31 = vld [vmem:[%s1433_s6 + $0x170] sm:$0xf]  ;;  %v924_v38 = vor.u32 %v1050_v29, %v923_v28  ;;  %v1025_v39 = vld [vmem:[#allocation3 + $0x4] sm:$0xf]  ;;  %v825_v40 = vld [vmem:[#allocation3 + $0x8] sm:$0xf0] }
  0x42   : > { %593 = vmatpush.bf16.msra.mxu1 %v952_v5  ;;  %v823_v35 = vld [vmem:[#allocation3] sm:$0xf]  ;;  %v1020_v41 = vor.u32 %v1074_v32, %v1019_v31  ;;  %v911_v42 = vld [vmem:[%s1433_s6 + $0x98] sm:$0xf]  ;;  %v1047_v43 = vld [vmem:[%s1433_s6 + $0xa0] sm:$0xf0]  ;;  %v828_v47 = vor.u32 %v1025_v39, %v825_v40 }
  0x43   : > { %607 = vmatpush.bf16.msra.mxu2 %v860_v6  ;;  %v1509_v44 = vor.u32 %v1026_v36, %v823_v35  ;;  %v1007_v45 = vld [vmem:[%s1433_s6 + $0x158] sm:$0xf]  ;;  %v1071_v46 = vld [vmem:[%s1433_s6 + $0x160] sm:$0xf0]  ;;  %v912_v48 = vor.u32 %v1047_v43, %v911_v42  ;;  %v899_v50 = vld [vmem:[%s1433_s6 + $0x80] sm:$0xf] }
  0x44   : > { %621 = vmatpush.bf16.msra.mxu3 %v956_v10  ;;  %v1008_v49 = vor.u32 %v1071_v46, %v1007_v45  ;;  %v1044_v51 = vld [vmem:[%s1433_s6 + $0x88] sm:$0xf0]  ;;  %v995_v52 = vld [vmem:[%s1433_s6 + $0x140] sm:$0xf]  ;;  %v887_v56 = vld [vmem:[%s1433_s6 + $0x68] sm:$0xf] }
  0x45   : > { %580 = vmatpush.bf16.msra.mxu0 %v844_v16  ;;  %v1068_v53 = vld [vmem:[%s1433_s6 + $0x148] sm:$0xf0]  ;;  %v900_v54 = vor.u32 %v1044_v51, %v899_v50  ;;  %v1041_v57 = vld [vmem:[%s1433_s6 + $0x70] sm:$0xf0]  ;;  %v983_v58 = vld [vmem:[%s1433_s6 + $0x128] sm:$0xf] }
  0x46   : > { %594 = vmatpush.bf16.msra.mxu1 %v940_v18  ;;  %v996_v55 = vor.u32 %v1068_v53, %v995_v52  ;;  %v1065_v59 = vld [vmem:[%s1433_s6 + $0x130] sm:$0xf0]  ;;  %v888_v60 = vor.u32 %v1041_v57, %v887_v56  ;;  %v875_v62 = vld [vmem:[%s1433_s6 + $0x50] sm:$0xf]  ;;  %v1038_v63 = vld [vmem:[%s1433_s6 + $0x58] sm:$0xf0] }
  0x47   : > { %608 = vmatpush.bf16.msra.mxu2 %v848_v19  ;;  %v984_v61 = vor.u32 %v1065_v59, %v983_v58  ;;  %v971_v0 = vld [vmem:[%s1433_s6 + $0x110] sm:$0xf]  ;;  %v1062_v1 = vld [vmem:[%s1433_s6 + $0x118] sm:$0xf0]  ;;  %v876_v2 = vor.u32 %v1038_v63, %v875_v62  ;;  %v863_v4 = vld [vmem:[%s1433_s6 + $0x38] sm:$0xf] }
  0x48   : > { %622 = vmatpush.bf16.msra.mxu3 %v944_v23  ;;  %v972_v3 = vor.u32 %v1062_v1, %v971_v0  ;;  %v1035_v5 = vld [vmem:[%s1433_s6 + $0x40] sm:$0xf0]  ;;  %v959_v6 = vld [vmem:[%s1433_s6 + $0xf8] sm:$0xf]  ;;  %v851_v10 = vld [vmem:[%s1433_s6 + $0x20] sm:$0xf] }
  0x49   : > { %581 = vmatpush.bf16.msra.mxu0 %v832_v30  ;;  %v1059_v7 = vld [vmem:[%s1433_s6 + $0x100] sm:$0xf0]  ;;  %v864_v8 = vor.u32 %v1035_v5, %v863_v4  ;;  %v1032_v11 = vld [vmem:[%s1433_s6 + $0x28] sm:$0xf0]  ;;  %v947_v12 = vld [vmem:[%s1433_s6 + $0xe0] sm:$0xf] }
  0x4a   : > { %595 = vmatpush.bf16.msra.mxu1 %v928_v33  ;;  %v960_v9 = vor.u32 %v1059_v7, %v959_v6  ;;  %v1056_v13 = vld [vmem:[%s1433_s6 + $0xe8] sm:$0xf0]  ;;  %v852_v14 = vor.u32 %v1032_v11, %v851_v10  ;;  %v839_v16 = vld [vmem:[%s1433_s6 + $0x8] sm:$0xf]  ;;  %v1029_v17 = vld [vmem:[%s1433_s6 + $0x10] sm:$0xf0] }
  0x4b   : > { %609 = vmatpush.bf16.msra.mxu2 %v836_v34  ;;  %v948_v15 = vor.u32 %v1056_v13, %v947_v12  ;;  %v935_v18 = vld [vmem:[%s1433_s6 + $0xc8] sm:$0xf]  ;;  %v1053_v19 = vld [vmem:[%s1433_s6 + $0xd0] sm:$0xf0]  ;;  %v840_v20 = vor.u32 %v1029_v17, %v839_v16  ;;  %s219_s19 = scalar_lea.vmem [#allocation8], %s1078_s17  ;;  %s1075_s24 = smul.u32 12, %s1298_s12 }
  0x4c   : > { %623 = vmatpush.bf16.msra.mxu3 %v932_v37  ;;  %582 = vmatmul.bf16.vlgmr.msra.gmra.mxu0 %v1509_v44  ;;  %v936_v21 = vor.u32 %v1053_v19, %v935_v18  ;;  %s703_s21 = sshll.u32 %s219_s19, 4  ;;  %s688_s23 = scalar_lea.sflag [#allocation5], %s1429_s30  ;;  %s704_s21 = int_to_ptr.vmem [resolvable:$true] %s703_s21 }
  0x4d   : > { %630 = vmatpush.bf16.msrb.mxu0 %v924_v38  ;;  %596 = vmatmul.bf16.vlgmr.msra.gmra.mxu1 %v828_v47  ;;  %s702_s16 = scalar_lea.hbm %s1581_s2, %s1075_s24  ;;  %s1240_s27 = scalar_lea.hbm %s1581_s2, 48 }
  0x4e   : > { %644 = vmatpush.bf16.msrb.mxu1 %v1020_v41  ;;  %610 = vmatmul.bf16.vlgmr.msra.gmra.mxu2 %v1509_v44  ;;  %s705_s22 = sshll.u32 %s702_s16, 4  ;;  %s706_s22 = int_to_ptr.hbm [resolvable:$true] %s705_s22 }
  0x4f   : > { %624 = vmatmul.bf16.vlgmr.msra.gmra.mxu3 %v828_v47  ;;  %s1234_s18 = sshra.s32 %s706_s22, 4  ;;  %s1235_s18 = int_to_ptr.hbm [resolvable:$true] %s1234_s18 }
  0x50   : > { %s1236_s12 = scalar_lea.hbm %s1235_s18, 24  ;;  %p1241_p8 = scmp.lt.s32.totalorder %s1235_s18, %s1581_s2 }
  0x51   : > { %631 = vmatpush.bf16.msrb.mxu0 %v912_v48  ;;  %p1237_p1 = scmp.ne.s32.totalorder %s1235_s18, %s1236_s12  ;;  %p1242_p12 = scmp.lt.s32.totalorder %s1240_s27, %s1236_s12 }
  0x52   : > { %645 = vmatpush.bf16.msrb.mxu1 %v1008_v49 }
  0x53   : > { %p1238_p2 = pnand %p1237_p1, %p1407_p5  ;;  %p1243_p13 = por %p1242_p12, %p1241_p8 }
  0x55   : > { %632 = vmatpush.bf16.msrb.mxu0 %v900_v54  ;;  %p1239_p4 = pneg %p1238_p2 }
  0x56   : > { %646 = vmatpush.bf16.msrb.mxu1 %v996_v55 }
  0x57   : > { %p1244_p0 = pnand %p1243_p13, %p1239_p4 }
  0x59   : > { %633 = vmatpush.bf16.msrb.mxu0 %v888_v60 }
  0x5a   : > { %647 = vmatpush.bf16.msrb.mxu1 %v984_v61 }
  0x5d   : > { %634 = vmatpush.bf16.msrb.mxu0 %v876_v2 }
  0x5e   : > { %648 = vmatpush.bf16.msrb.mxu1 %v972_v3 }
  0x61   : > { %635 = vmatpush.bf16.msrb.mxu0 %v864_v8 }
  0x62   : > { %649 = vmatpush.bf16.msrb.mxu1 %v960_v9 }
  0x65   : > { %636 = vmatpush.bf16.msrb.mxu0 %v852_v14 }
  0x66   : > { %650 = vmatpush.bf16.msrb.mxu1 %v948_v15 }
  0x69   : > { %637 = vmatpush.bf16.msrb.mxu0 %v840_v20 }
  0x6a   : > { %651 = vmatpush.bf16.msrb.mxu1 %v936_v21 }
  0x6c   : > { %638 = vmatmul.bf16.vlgmr.msrb.gmra.mxu0 %v1509_v44 }
  0x6d   : > { %652 = vmatmul.bf16.vlgmr.msrb.gmra.mxu1 %v828_v47 }
  0xc9   : > { %v583_v22 = vpop.f32.mrf.mxu0 }
  0xca   : > { %v597_v23 = vpop.f32.mrf.mxu1 }
  0xcb   : > { %v598_v24 = vadd.f32 %v597_v23, %v583_v22 }
  0xd1   : > { %v611_v25 = vpop.f32.mrf.mxu2  ;;  %v585_v29 = vpop.f32.mrf.mxu0 }
  0xd2   : > { %v625_v26 = vpop.f32.mrf.mxu3  ;;  %v599_v30 = vpop.f32.mrf.mxu1 }
  0xd3   : > { %v626_v27 = vadd.f32 %v625_v26, %v611_v25  ;;  %v600_v31 = vadd.f32 %v599_v30, %v585_v29 }
  0xd5   : > { %v679_v28 = vpack.c.bf16 %v626_v27, %v598_v24 }
  0xd7   : > { %683 = vst [vmem:[%s219_s19] sm:$0xff] %v679_v28 }
  0xd9   : > { %v613_v32 = vpop.f32.mrf.mxu2 }
  0xda   : > { %v627_v33 = vpop.f32.mrf.mxu3 }
  0xdb   : > { %v628_v34 = vadd.f32 %v627_v33, %v613_v32 }
  0xdd   : > { %v681_v35 = vpack.c.bf16 %v628_v34, %v600_v31 }
  0xdf   : > { %685 = vst [vmem:[%s219_s19 + $0xc] sm:$0xff] %v681_v35 }
  0xe9   : > { %v639_v36 = vpop.f32.mrf.mxu0 }
  0xea   : > { %v653_v37 = vpop.f32.mrf.mxu1 }
  0xeb   : > { %v654_v38 = vadd.f32 %v653_v37, %v639_v36 }
  0xed   : > { %v680_v39 = vpack.c.bf16 %v654_v38, %v654_v38 }
  0xef   : > { %684 = vst [vmem:[%s219_s19 + $0x8] sm:$0xf] %v680_v39 }
  0xf1   : > { %v641_v40 = vpop.f32.mrf.mxu0 }
  0xf2   : > { %v655_v41 = vpop.f32.mrf.mxu1 }
  0xf3   : > { %v656_v42 = vadd.f32 %v655_v41, %v641_v40 }
  0xf5   : > { %v682_v43 = vpack.c.bf16 %v656_v42, %v656_v42 }
  0xf7   : > { %686 = vst [vmem:[%s219_s19 + $0x14] sm:$0xf] %v682_v43 }
  0xf8   : > { %1247 = shalt.err (!%p1244_p0)
}
  0xf9   : > { %s1314_s30 = smov 192   ;;  %s1315_s5 = smov 384  }
  0xfa   : > { %s1316_s6 = smov 12  }
  0xfb   : > { %1085 = dma.vmem_to_hbm [thread:$0]  (%p1407_p5), %s704_s21, 384, %s706_s22, %s688_s23, %s1314_s30, %s1315_s5, %s1316_s6  }
  0xfc PF: > { %s720_s17 = sand.u32 1, %s1286_s9   ;;  %p1096_p3 = pnand %p817_p11, %p1381_p6 }
  0xfd   : > { %s721_s19 = scalar_lea.sflag [#allocation5], %s720_s17 }
  0xfe   : > { %p1097_p7 = pneg %p1096_p3 }
 0x100   : > { %1281 = dma.done.wait (%p1097_p7), %s721_s19, 384  }
 0x101   : > { %1283 = vsyncadd (%p1097_p7), %s721_s19, 4294966912  ;;  %s19_s14 = sadd.s32 1, %s1306_s14   ;;  %s1588_s9 = smov %s1290_s10 }
 0x102   : > { %p16_p9 = scmp.ge.s32.totalorder %s19_s14, 4   ;;  %s1589_s10 = smov %s1294_s11 }
 0x103   : > { %s1590_s11 = smov %s1416_s7  ;;  %s1591_s12 = smov %s1302_s13 }
 0x104   : > { %s1592_s13 = smov %s1594_s29  ;;  %18 = sbr.rel (!%p16_p9) target bundleno = 7 (0x7), region = 87 }
 0x109   :  { %727 = vsyncpa [#allocation4], 1 }
 0x10a   :  { %729 = vsyncpa [#allocation4 + $0x1], 1 }
 0x10b   :  { %730 = vsyncpa [#allocation7], 1 }
 0x10c   :  { %732 = vsyncpa [#allocation7 + $0x1], 1 }
 0x10d   :  { %733 = vsyncpa [#allocation5], 1 }
 0x10e   :  { %735 = vsyncpa [#allocation5 + $0x1], 1 }

</bundles_post_ra>
